<compile_context>
chip_gen: v7x
topology: tpu7x:2x2x1
jax: 0.10.0
libtpu: 0.0.40
codegen_flags: <defaults>
</compile_context>

<pallas_src>
import jax
import jax.numpy as jnp
from jax.experimental import pallas as pl
from jax.experimental.pallas import tpu as pltpu

# ---- static configuration (small shapes) -----------------------------------
B, C, T = 2, 2, 576            # batch, channels, time samples
N_FFT = 128
HOP = 64
N_FRAMES = (T - N_FFT) // HOP + 1        # 8   (center=False framing)
N_FREQ = N_FFT // 2 + 1                  # 65
FPAD = 128                               # freq axis padded to a full lane width
POWER = 2.0                              # spectrogram power, applied at the end
P_AUG = 0.5
BC = B * C
BCNF = BC * N_FRAMES                     # 32 rows fed to the MXU
# TODO(synk): normalized=True path not exercised (the reference normalize() calls
# .clip on torch.max's (values, indices) tuple, which errors) -> normalized=False.


# ---------------------------------------------------------------------------
# Fused kernel: in-kernel framing -> windowed DFT (MXU) -> |.|^POWER
#               -> (spec of original wave, spec of augmented wave + freq mask)
# ---------------------------------------------------------------------------
def _fused_compose_kernel(gain_apply_ref, gain_ref, keep_ref,
                          wave_ref, dftw_ref, o_wave_ref, o_x_ref):
    # ---- framing: 8 overlapping 128-sample frames per waveform row.
    # Row ordering is frame-major: row = frame * (B*C) + b*C + c.
    frames = jnp.concatenate(
        [wave_ref[:, fi * HOP: fi * HOP + N_FFT] for fi in range(N_FRAMES)],
        axis=0,
    )                                                        # [32, 128]

    # ---- windowed DFT on the MXU: re | im side by side, freq padded to FPAD.
    ri = jnp.dot(frames, dftw_ref[...], preferred_element_type=jnp.float32)  # [32, 256]
    re = ri[:, :FPAD]
    im = ri[:, FPAD:]
    mag_sq = re * re + im * im                               # |STFT|^2, [32, 128]

    if POWER == 2.0:                                         # static branch
        p = mag_sq
    else:
        p = jnp.power(mag_sq, POWER * 0.5)                   # abs() ** POWER

    # spectrogram of the ORIGINAL waveforms (no transforms)
    o_wave_ref[...] = p

    # spectrogram of the augmented waveform + spec transforms, via linearity:
    #   gain -> g^POWER if applied; polarity -> (-1)^POWER-of-magnitude = 1 (drops out);
    #   frequency masking -> 0/1 keep mask (idempotent under the power).
    rows = []
    for b in range(B):
        g_eff = jnp.where(gain_apply_ref[b] == 1, gain_ref[b], jnp.float32(1.0))
        if POWER == 2.0:
            g_pow = g_eff * g_eff
        else:
            g_pow = jnp.power(g_eff, POWER)
        row = keep_ref[b:b + 1, :] * g_pow                   # [1, FPAD]
        for _c in range(C):
            rows.append(row)
    mult_bc = jnp.concatenate(rows, axis=0)                  # [B*C, FPAD] = [4, 128]
    mult = jnp.concatenate([mult_bc] * N_FRAMES, axis=0)     # frame-major, [32, 128]
    o_x_ref[...] = p * mult


# ---------------------------------------------------------------------------
# Constant construction (folded at jit-compile time) and wrapper
# ---------------------------------------------------------------------------
def _hann_window():
    n = jnp.arange(N_FFT, dtype=jnp.float32)
    return 0.5 - 0.5 * jnp.cos(2.0 * jnp.pi * n / N_FFT)


def _windowed_dft_cos_sin_padded():
    """[N_FFT, 2*FPAD]: hann-windowed cos | -sin DFT matrices, freq-padded 65 -> 128."""
    n = jnp.arange(N_FFT, dtype=jnp.float32)[:, None]
    k = jnp.arange(N_FREQ, dtype=jnp.float32)[None, :]
    ang = 2.0 * jnp.pi * n * k / N_FFT
    w = _hann_window()[:, None]
    cosm = w * jnp.cos(ang)
    sinm = w * (-jnp.sin(ang))
    pad = ((0, 0), (0, FPAD - N_FREQ))
    return jnp.concatenate([jnp.pad(cosm, pad), jnp.pad(sinm, pad)], axis=1)


def _to_ncft(p):
    """[N_FRAMES*B*C, FPAD] (frame-major rows) -> [B, C, N_FREQ, N_FRAMES]."""
    s = p[:, :N_FREQ].reshape(N_FRAMES, B, C, N_FREQ)
    return jnp.transpose(s, (1, 2, 3, 0))


@jax.jit
def batch_audio_compose_forward(x, gain_apply, gain_factor, pol_apply, freq_keep):
    """Mirrors BatchAudioComposeTransforms.forward for the instantiation above.

    pol_apply is accepted for interface fidelity, but polarity inversion (*-1) cancels
    under |.|^POWER, so it does not appear in the fused kernel.
    """
    del pol_apply
    wave2d = x.reshape(BC, T)
    dftw = _windowed_dft_cos_sin_padded()        # constant-folded under jit

    spec_wave, spec_x = pl.pallas_call(
        _fused_compose_kernel,
        out_shape=(jax.ShapeDtypeStruct((BCNF, FPAD), jnp.float32),
                   jax.ShapeDtypeStruct((BCNF, FPAD), jnp.float32)),
        in_specs=[
            pl.BlockSpec(memory_space=pltpu.MemorySpace.SMEM),   # gain_apply  [B] i32
            pl.BlockSpec(memory_space=pltpu.MemorySpace.SMEM),   # gain_factor [B] f32
            pl.BlockSpec(memory_space=pltpu.MemorySpace.VMEM),   # freq_keep   [B, FPAD]
            pl.BlockSpec(memory_space=pltpu.MemorySpace.VMEM),   # wave        [B*C, T]
            pl.BlockSpec(memory_space=pltpu.MemorySpace.VMEM),   # dftw        [128, 256]
        ],
        out_specs=(pl.BlockSpec(memory_space=pltpu.MemorySpace.VMEM),
                   pl.BlockSpec(memory_space=pltpu.MemorySpace.VMEM)),
    )(gain_apply, gain_factor, freq_keep, wave2d, dftw)

    return _to_ncft(spec_wave), _to_ncft(spec_x)


# ---------------------------------------------------------------------------
# Pure-JAX reference (full-fidelity path: wave aug -> frames -> window -> DFT
# -> freq mask -> power; no linearity shortcut)
# ---------------------------------------------------------------------------
def _reference(x, gain_apply, gain_factor, pol_apply, freq_keep):
    g = jnp.where(gain_apply == 1, gain_factor, 1.0)
    s = jnp.where(pol_apply == 1, -1.0, 1.0)
    x_aug = x * (g * s)[:, None, None]

    win = _hann_window()[None, None, :]
    n = jnp.arange(N_FFT, dtype=jnp.float32)[:, None]
    k = jnp.arange(N_FREQ, dtype=jnp.float32)[None, :]
    ang = 2.0 * jnp.pi * n * k / N_FFT
    cosm, sinm = jnp.cos(ang), -jnp.sin(ang)
    idx = jnp.arange(N_FRAMES)[:, None] * HOP + jnp.arange(N_FFT)[None, :]

    def spec(w, keep):                                       # keep: [B, N_FREQ]
        f = w.reshape(BC, T)[:, idx] * win                   # [BC, NF, N_FFT]
        re = jnp.einsum("bnt,tf->bnf", f, cosm)
        im = jnp.einsum("bnt,tf->bnf", f, sinm)
        kbc = jnp.repeat(keep, C, axis=0)[:, None, :]        # [BC, 1, N_FREQ]
        mag = (re * kbc) ** 2 + (im * kbc) ** 2
        p = mag if POWER == 2.0 else mag ** (POWER * 0.5)
        return p.reshape(B, C, N_FRAMES, N_FREQ).transpose(0, 1, 3, 2)

    keep_all = jnp.ones((B, N_FREQ), jnp.float32)
    return spec(x, keep_all), spec(x_aug, freq_keep[:, :N_FREQ])


# ---------------------------------------------------------------------------
if __name__ == "__main__":
    key = jax.random.PRNGKey(0)
    k_x, k_g, k_gv, k_p, k_fm, k_f0, k_fw = jax.random.split(key, 7)

    x = jax.random.normal(k_x, (B, C, T), jnp.float32)

    # deterministic per-batch random augmentation parameters (p = 0.5)
    gain_apply = jax.random.bernoulli(k_g, P_AUG, (B,)).astype(jnp.int32)
    gain_db = jax.random.uniform(k_gv, (B,), jnp.float32, -6.0, 0.0)
    gain_factor = jnp.power(10.0, gain_db / 20.0).astype(jnp.float32)
    pol_apply = jax.random.bernoulli(k_p, P_AUG, (B,)).astype(jnp.int32)

    # frequency-masking spec transform -> per-batch 0/1 keep mask, padded to FPAD lanes
    fm_apply = jax.random.bernoulli(k_fm, P_AUG, (B,))
    f0 = jax.random.randint(k_f0, (B,), 0, N_FREQ - 16)
    fw = jax.random.randint(k_fw, (B,), 1, 16)
    freqs = jnp.arange(FPAD)[None, :]
    masked = (freqs >= f0[:, None]) & (freqs < (f0 + fw)[:, None]) & fm_apply[:, None]
    freq_keep = jnp.where(masked, 0.0, 1.0).astype(jnp.float32)     # [B, FPAD]

    specgrams, x_spec = batch_audio_compose_forward(
        x, gain_apply, gain_factor, pol_apply, freq_keep)
    specgrams = jax.block_until_ready(specgrams)
    x_spec = jax.block_until_ready(x_spec)

    ref_specgrams, ref_x_spec = _reference(
        x, gain_apply, gain_factor, pol_apply, freq_keep)

    assert specgrams.shape == (B, C, N_FREQ, N_FRAMES)
    assert x_spec.shape == (B, C, N_FREQ, N_FRAMES)
    assert jnp.allclose(specgrams, ref_specgrams, rtol=1e-4, atol=1e-4)
    assert jnp.allclose(x_spec, ref_x_spec, rtol=1e-4, atol=1e-4)

    print("KERNEL_OK")
</pallas_src>

<mosaic_0001>
module attributes {stable_mosaic.version = 11 : i64} {
  func.func @_fused_compose_kernel(%arg0: memref<2xi32, #tpu.memory_space<smem>>, %arg1: memref<2xf32, #tpu.memory_space<smem>>, %arg2: memref<2x128xf32, #tpu.memory_space<vmem>>, %arg3: memref<4x576xf32, #tpu.memory_space<vmem>>, %arg4: memref<128x256xf32, #tpu.memory_space<vmem>>, %arg5: memref<32x128xf32, #tpu.memory_space<vmem>>, %arg6: memref<32x128xf32, #tpu.memory_space<vmem>>) attributes {dimension_semantics = [], scalar_prefetch = 0 : i64, scratch_operands = 0 : i64, tpu.core_type = #tpu.core_type<tc>} {
    %c0 = arith.constant 0 : index
    %c0_0 = arith.constant 0 : index
    %0 = vector.load %arg3[%c0, %c0_0] : memref<4x576xf32, #tpu.memory_space<vmem>>, vector<4x128xf32>
    %c0_1 = arith.constant 0 : index
    %c64 = arith.constant 64 : index
    %1 = vector.load %arg3[%c0_1, %c64] : memref<4x576xf32, #tpu.memory_space<vmem>>, vector<4x128xf32>
    %c0_2 = arith.constant 0 : index
    %c128 = arith.constant 128 : index
    %2 = vector.load %arg3[%c0_2, %c128] : memref<4x576xf32, #tpu.memory_space<vmem>>, vector<4x128xf32>
    %c0_3 = arith.constant 0 : index
    %c192 = arith.constant 192 : index
    %3 = vector.load %arg3[%c0_3, %c192] : memref<4x576xf32, #tpu.memory_space<vmem>>, vector<4x128xf32>
    %c0_4 = arith.constant 0 : index
    %c256 = arith.constant 256 : index
    %4 = vector.load %arg3[%c0_4, %c256] : memref<4x576xf32, #tpu.memory_space<vmem>>, vector<4x128xf32>
    %c0_5 = arith.constant 0 : index
    %c320 = arith.constant 320 : index
    %5 = vector.load %arg3[%c0_5, %c320] : memref<4x576xf32, #tpu.memory_space<vmem>>, vector<4x128xf32>
    %c0_6 = arith.constant 0 : index
    %c384 = arith.constant 384 : index
    %6 = vector.load %arg3[%c0_6, %c384] : memref<4x576xf32, #tpu.memory_space<vmem>>, vector<4x128xf32>
    %c0_7 = arith.constant 0 : index
    %c448 = arith.constant 448 : index
    %7 = vector.load %arg3[%c0_7, %c448] : memref<4x576xf32, #tpu.memory_space<vmem>>, vector<4x128xf32>
    %8 = tpu.concatenate %0, %1, %2, %3, %4, %5, %6, %7 in 0 : vector<4x128xf32>, vector<4x128xf32>, vector<4x128xf32>, vector<4x128xf32>, vector<4x128xf32>, vector<4x128xf32>, vector<4x128xf32>, vector<4x128xf32> -> vector<32x128xf32>
    %c0_8 = arith.constant 0 : index
    %c0_9 = arith.constant 0 : index
    %9 = vector.load %arg4[%c0_8, %c0_9] : memref<128x256xf32, #tpu.memory_space<vmem>>, vector<128x256xf32>
    %cst = arith.constant dense<0.000000e+00> : vector<32x256xf32>
    %10 = tpu.matmul %8, %9, %cst {dimension_numbers = #tpu.dot_dimension_numbers<[1], [0], [0], [1], [0, 0, 1, 1], [], []>} : vector<32x128xf32>, vector<128x256xf32>, vector<32x256xf32> -> vector<32x256xf32>
    %11 = vector.extract_strided_slice %10 {offsets = [0, 0], sizes = [32, 128], strides = [1, 1]} : vector<32x256xf32> to vector<32x128xf32>
    %12 = vector.extract_strided_slice %10 {offsets = [0, 128], sizes = [32, 128], strides = [1, 1]} : vector<32x256xf32> to vector<32x128xf32>
    %13 = arith.mulf %11, %11 : vector<32x128xf32>
    %14 = arith.mulf %12, %12 : vector<32x128xf32>
    %15 = arith.addf %13, %14 : vector<32x128xf32>
    %c0_10 = arith.constant 0 : index
    %c0_11 = arith.constant 0 : index
    %16 = vector.load %arg5[%c0_10, %c0_11] : memref<32x128xf32, #tpu.memory_space<vmem>>, vector<32x128xf32>
    tpu.vector_store %arg5[%c0_10, %c0_11], %15 {strides = array<i32>} : memref<32x128xf32, #tpu.memory_space<vmem>>, vector<32x128xf32>,
    %c0_12 = arith.constant 0 : index
    %17 = memref.load %arg0[%c0_12] : memref<2xi32, #tpu.memory_space<smem>>
    %c1_i32 = arith.constant 1 : i32
    %18 = arith.cmpi eq, %17, %c1_i32 : i32
    %c0_13 = arith.constant 0 : index
    %19 = memref.load %arg1[%c0_13] : memref<2xf32, #tpu.memory_space<smem>>
    %cst_14 = arith.constant 1.000000e+00 : f32
    %20 = arith.select %18, %19, %cst_14 : f32
    %21 = arith.mulf %20, %20 : f32
    %c0_15 = arith.constant 0 : index
    %c0_16 = arith.constant 0 : index
    %22 = vector.load %arg2[%c0_15, %c0_16] : memref<2x128xf32, #tpu.memory_space<vmem>>, vector<1x128xf32>
    %23 = vector.broadcast %21 : f32 to vector<1x128xf32>
    %24 = arith.mulf %22, %23 : vector<1x128xf32>
    %c1 = arith.constant 1 : index
    %25 = memref.load %arg0[%c1] : memref<2xi32, #tpu.memory_space<smem>>
    %c1_i32_17 = arith.constant 1 : i32
    %26 = arith.cmpi eq, %25, %c1_i32_17 : i32
    %c1_18 = arith.constant 1 : index
    %27 = memref.load %arg1[%c1_18] : memref<2xf32, #tpu.memory_space<smem>>
    %cst_19 = arith.constant 1.000000e+00 : f32
    %28 = arith.select %26, %27, %cst_19 : f32
    %29 = arith.mulf %28, %28 : f32
    %c1_20 = arith.constant 1 : index
    %c0_21 = arith.constant 0 : index
    %30 = vector.load %arg2[%c1_20, %c0_21] : memref<2x128xf32, #tpu.memory_space<vmem>>, vector<1x128xf32>
    %31 = vector.broadcast %29 : f32 to vector<1x128xf32>
    %32 = arith.mulf %30, %31 : vector<1x128xf32>
    %33 = tpu.concatenate %24, %24, %32, %32 in 0 : vector<1x128xf32>, vector<1x128xf32>, vector<1x128xf32>, vector<1x128xf32> -> vector<4x128xf32>
    %34 = tpu.concatenate %33, %33, %33, %33, %33, %33, %33, %33 in 0 : vector<4x128xf32>, vector<4x128xf32>, vector<4x128xf32>, vector<4x128xf32>, vector<4x128xf32>, vector<4x128xf32>, vector<4x128xf32>, vector<4x128xf32> -> vector<32x128xf32>
    %35 = arith.mulf %15, %34 : vector<32x128xf32>
    %c0_22 = arith.constant 0 : index
    %c0_23 = arith.constant 0 : index
    %36 = vector.load %arg6[%c0_22, %c0_23] : memref<32x128xf32, #tpu.memory_space<vmem>>, vector<32x128xf32>
    tpu.vector_store %arg6[%c0_22, %c0_23], %35 {strides = array<i32>} : memref<32x128xf32, #tpu.memory_space<vmem>>, vector<32x128xf32>,
    return
  }
}

</mosaic_0001>

<bundles_post_ra>
// kernel: batch_audio_compose_forward.1
= control target key start
LH: loop header
LB: loop body
LE: loop exit
PB: predicated region body
PF: predicated region fallthrough
CT: control target
= control target key end

     0   :  { %12 = vsyncpa [#allocation3], 0  ;;  %s596_s0 = inlined_call_operand.vmem [shape: s32[2], index: 0, kind: input, shape index: {}]   ;;  %s597_s1 = inlined_call_operand.vmem [shape: f32[2], index: 1, kind: input, shape index: {}]   ;;  %s598_s2 = inlined_call_operand.vmem [shape: f32[2,128], index: 2, kind: input, shape index: {}]   ;;  %s599_s3 = inlined_call_operand.vmem [shape: f32[4,576], index: 3, kind: input, shape index: {}]   ;;  %s600_s4 = inlined_call_operand.vmem [shape: f32[128,256], index: 4, kind: input, shape index: {}]   ;;  %s601_s5 = inlined_call_operand.vmem [shape: f32[32,128], index: 5, kind: output, shape index: {0}]   ;;  %s602_s6 = inlined_call_operand.vmem [shape: f32[32,128], index: 6, kind: output, shape index: {1}]  }
   0x1   :  { %s20_s23 = sshll.u32 %s596_s0, 4  ;;  %s21_s23 = int_to_ptr.vmem [resolvable:$true] %s20_s23 }
   0x2   :  { %13 = vsyncpa [#allocation5], 0  ;;  %s30_s26 = sshll.u32 %s597_s1, 4  ;;  %s360_s27 = scalar_lea.vmem %s21_s23, 16  ;;  %s31_s26 = int_to_ptr.vmem [resolvable:$true] %s30_s26 }
   0x3   :  { %p361_p0 = scmp.ne.s32.totalorder %s21_s23, %s360_s27  ;;  %p365_p1 = scmp.lt.s32.totalorder %s21_s23, %s21_s23 }
   0x4   :  { %p366_p2 = scmp.lt.s32.totalorder %s360_s27, %s360_s27 }
   0x6   :  { %p367_p3 = por %p366_p2, %p365_p1 }
   0x8   :  { %p368_p4 = pnand %p367_p3, %p361_p0 }
   0xa   :  { %371 = shalt.err (!%p368_p4)
}
   0xb   :  { %s388_s28 = smov [#allocation2]   ;;  %s372_s29 = scalar_lea.vmem %s31_s26, 16 }
   0xc   :  { %23 = dma.vmem_to_smem %s21_s23, 16, %s388_s28, [#allocation3]  }
   0xd   :  { %p373_p5 = scmp.ne.s32.totalorder %s31_s26, %s372_s29  ;;  %p377_p6 = scmp.lt.s32.totalorder %s31_s26, %s31_s26 }
   0xe   :  { %p378_p7 = scmp.lt.s32.totalorder %s372_s29, %s372_s29 }
  0x10   :  { %p379_p8 = por %p378_p7, %p377_p6 }
  0x12   :  { %p380_p9 = pnand %p379_p8, %p373_p5 }
  0x14   :  { %383 = shalt.err (!%p380_p9)
}
  0x15   :  { %s389_s0 = smov [#allocation4]  }
  0x16   :  { %33 = dma.vmem_to_smem %s31_s26, 16, %s389_s0, [#allocation5]  }
  0x17   :  { %384 = dma.done.wait [#allocation3], 16  }
  0x18   :  { %385 = vsyncadd [#allocation3], 4294967280 }
  0x19   :  { %386 = dma.done.wait [#allocation5], 16  }
  0x1a   :  { %387 = vsyncadd [#allocation5], 4294967280 }
  0x1b   :  { %46 = sfence }
  0x1c   :  { %v48_v0 = vld [vmem:[%s599_s3] sm:$0xff]  ;;  %v52_v2 = vld [vmem:[%s599_s3 + $0x8] sm:$0xff]  ;;  %v96_v8 = vld [vmem:[%s600_s4 + $0x18] sm:$0xff]  ;;  %v390_v9 = vmov 0.0   ;;  %s391_s7 = smov 64   ;;  %vm61_vm0 = vcmask 523264  }
  0x1d   :  { %v50_v1 = vld [vmem:[%s599_s3 + $0x4] sm:$0xff]  ;;  %v56_v3 = vcombine.low %v48_v0, %v48_v0  ;;  %v73_v5 = vcombine.low %v52_v2, %v52_v2  ;;  %v54_v6 = vld [vmem:[%s599_s3 + $0xc] sm:$0xff]  ;;  %189 = vmatprep.mubr.f32.mxu0 %v390_v9  ;;  %201 = vmatprep.mubr.f32.mxu1 %v390_v9  ;;  %v100_v18 = vld [vmem:[%s600_s4 + $0x38] sm:$0xff]  ;;  %vm88_vm1 = vcmask 1043456   ;;  %s282_s8 = sld [smem:[#allocation2 + $0x1]]  ;;  %s232_s9 = sld [smem:[#allocation4]] }
  0x1e   :  { %v65_v4 = vcombine.low %v50_v1, %v50_v1  ;;  %v94_v7 = vld [vmem:[%s600_s4 + $0x8] sm:$0xff]  ;;  %v81_v10 = vcombine.low %v54_v6, %v54_v6  ;;  %v93_v12 = vld [vmem:[%s600_s4] sm:$0xff]  ;;  %v95_v13 = vld [vmem:[%s600_s4 + $0x10] sm:$0xff]  ;;  %s283_s10 = sld [smem:[#allocation4 + $0x1]]  ;;  %vm254_vm2 = vcmask 1040384   ;;  %vm256_vm3 = vcmask 1041408  }
  0x1f   :  { %v284_v11 = vpack.c.bf16 %v96_v8, %v94_v7  ;;  %v98_v14 = vld [vmem:[%s600_s4 + $0x28] sm:$0xff]  ;;  %v336_v15 = vpack.i.bf16 %v48_v0, %v56_v3  ;;  %v286_v17 = vpack.c.bf16 %v95_v13, %v93_v12  ;;  %v97_v19 = vld [vmem:[%s600_s4 + $0x20] sm:$0xff]  ;;  %v99_v20 = vld [vmem:[%s600_s4 + $0x30] sm:$0xff]  ;;  %v341_v24 = vpack.i.bf16 %v52_v2, %v73_v5 }
  0x20   :  { %v346_v16 = vpack.i.bf16 %v50_v1, %v65_v4  ;;  %v288_v21 = vpack.c.bf16 %v100_v18, %v98_v14  ;;  %v102_v22 = vld [vmem:[%s600_s4 + $0x48] sm:$0xff]  ;;  %v104_v23 = vld [vmem:[%s600_s4 + $0x58] sm:$0xff]  ;;  %v351_v25 = vpack.i.bf16 %v54_v6, %v81_v10  ;;  %v290_v26 = vpack.c.bf16 %v99_v20, %v97_v19  ;;  %v101_v28 = vld [vmem:[%s600_s4 + $0x40] sm:$0xff] }
  0x21   :  { %285 = vmatprep.subr.bf16.mxu0 %v284_v11  ;;  %316 = vmatprep.subr.bf16.mxu1 %v284_v11  ;;  %v292_v27 = vpack.c.bf16 %v104_v23, %v102_v22  ;;  %v103_v29 = vld [vmem:[%s600_s4 + $0x50] sm:$0xff]  ;;  %v106_v30 = vld [vmem:[%s600_s4 + $0x68] sm:$0xff]  ;;  %v108_v31 = vld [vmem:[%s600_s4 + $0x78] sm:$0xff]  ;;  %vm258_vm4 = vcmask 1042432  }
  0x22   :  { %337 = vrot.lane.b32.xlu0 %v336_v15, %s391_s7  ;;  %347 = vrot.lane.b32.xlu1 %v346_v16, %s391_s7  ;;  %v294_v32 = vpack.c.bf16 %v103_v29, %v101_v28  ;;  %v296_v33 = vpack.c.bf16 %v108_v31, %v106_v30  ;;  %v105_v34 = vld [vmem:[%s600_s4 + $0x60] sm:$0xff]  ;;  %v107_v35 = vld [vmem:[%s600_s4 + $0x70] sm:$0xff] }
  0x23   :  { %287 = vmatpush1.bf16.msra.mxu0 %v286_v17  ;;  %324 = vmatpush1.bf16.msra.mxu1 %v286_v17  ;;  %v110_v36 = vld [vmem:[%s600_s4 + $0x88] sm:$0xff]  ;;  %v112_v37 = vld [vmem:[%s600_s4 + $0x98] sm:$0xff]  ;;  %v298_v38 = vpack.c.bf16 %v107_v35, %v105_v34  ;;  %v109_v40 = vld [vmem:[%s600_s4 + $0x80] sm:$0xff]  ;;  %p239_p11 = scmp.eq.s32.totalorder %s282_s8, 1 }
  0x24   :  { %289 = vmatprep.subr.bf16.mxu0 %v288_v21  ;;  %317 = vmatprep.subr.bf16.mxu1 %v288_v21  ;;  %v300_v39 = vpack.c.bf16 %v112_v37, %v110_v36  ;;  %v111_v41 = vld [vmem:[%s600_s4 + $0x90] sm:$0xff]  ;;  %v114_v42 = vld [vmem:[%s600_s4 + $0xa8] sm:$0xff]  ;;  %v116_v43 = vld [vmem:[%s600_s4 + $0xb8] sm:$0xff] }
  0x25   :  { %v302_v44 = vpack.c.bf16 %v111_v41, %v109_v40  ;;  %v304_v45 = vpack.c.bf16 %v116_v43, %v114_v42  ;;  %v113_v46 = vld [vmem:[%s600_s4 + $0xa0] sm:$0xff]  ;;  %v115_v47 = vld [vmem:[%s600_s4 + $0xb0] sm:$0xff]  ;;  %v118_v48 = vld [vmem:[%s600_s4 + $0xc8] sm:$0xff]  ;;  %s606_s10 = smov (!%p239_p11, %s283_s10), 1.0 }
  0x26   :  { %342 = vrot.lane.b32.xlu0 %v341_v24, %s391_s7  ;;  %352 = vrot.lane.b32.xlu1 %v351_v25, %s391_s7  ;;  %v120_v49 = vld [vmem:[%s600_s4 + $0xd8] sm:$0xff]  ;;  %v306_v50 = vpack.c.bf16 %v115_v47, %v113_v46  ;;  %v117_v52 = vld [vmem:[%s600_s4 + $0xc0] sm:$0xff]  ;;  %s230_s7 = sld [smem:[#allocation2]]  ;;  %s242_s11 = smul.f32 %s606_s10, %s606_s10 }
  0x27   :  { %291 = vmatpush1.bf16.msra.mxu0 %v290_v26  ;;  %325 = vmatpush1.bf16.msra.mxu1 %v290_v26  ;;  %v308_v51 = vpack.c.bf16 %v120_v49, %v118_v48  ;;  %v119_v53 = vld [vmem:[%s600_s4 + $0xd0] sm:$0xff]  ;;  %v122_v54 = vld [vmem:[%s600_s4 + $0xe8] sm:$0xff]  ;;  %v124_v55 = vld [vmem:[%s600_s4 + $0xf8] sm:$0xff] }
  0x28   :  { %293 = vmatprep.subr.bf16.mxu0 %v292_v27  ;;  %318 = vmatprep.subr.bf16.mxu1 %v292_v27  ;;  %v310_v56 = vpack.c.bf16 %v119_v53, %v117_v52  ;;  %v312_v57 = vpack.c.bf16 %v124_v55, %v122_v54  ;;  %v121_v58 = vld [vmem:[%s600_s4 + $0xe0] sm:$0xff]  ;;  %v123_v59 = vld [vmem:[%s600_s4 + $0xf0] sm:$0xff]  ;;  %v51_v15 = vld [vmem:[%s599_s3 + $0x8] sm:$0xf]  ;;  %v244_v25 = vstv %s242_s11 }
  0x29   :  { %v314_v60 = vpack.c.bf16 %v123_v59, %v121_v58  ;;  %v47_v3 = vld [vmem:[%s599_s3] sm:$0xf]  ;;  %v49_v5 = vld [vmem:[%s599_s3 + $0x4] sm:$0xf]  ;;  %v53_v18 = vld [vmem:[%s599_s3 + $0xc] sm:$0xf] }
  0x2a   :  { %v235_v22 = vld [vmem:[%s598_s2] sm:$0x1] }
  0x2b   :  { %295 = vmatpush1.bf16.msra.mxu0 %v294_v32  ;;  %326 = vmatpush1.bf16.msra.mxu1 %v294_v32 }
  0x2c   :  { %297 = vmatprep.subr.bf16.mxu0 %v296_v33  ;;  %319 = vmatprep.subr.bf16.mxu1 %v296_v33  ;;  %p231_p10 = scmp.eq.s32.totalorder %s230_s7, 1 }
  0x2e   :  { %s604_s9 = smov (!%p231_p10, %s232_s9), 1.0 }
  0x2f   :  { %299 = vmatpush1.bf16.msra.mxu0 %v298_v38  ;;  %327 = vmatpush1.bf16.msra.mxu1 %v298_v38  ;;  %s234_s3 = smul.f32 %s604_s9, %s604_s9 }
  0x30   :  { %301 = vmatprep.subr.bf16.mxu0 %v300_v39  ;;  %320 = vmatprep.subr.bf16.mxu1 %v300_v39 }
  0x31   :  { %v236_v23 = vstv %s234_s3 }
  0x32   :  { %v237_v24 = vmul.f32 %v236_v23, %v235_v22 }
  0x33   :  { %303 = vmatpush1.bf16.msra.mxu0 %v302_v44  ;;  %328 = vmatpush1.bf16.msra.mxu1 %v302_v44 }
  0x34   :  { %305 = vmatprep.subr.bf16.mxu0 %v304_v45  ;;  %321 = vmatprep.subr.bf16.mxu1 %v304_v45  ;;  %v247_v27 = vrot.slane %v237_v24, 7 }
  0x36   :  { %v255_v29 = vsel %vm254_vm2, %v237_v24, %v247_v27 }
  0x37   :  { %307 = vmatpush1.bf16.msra.mxu0 %v306_v50  ;;  %329 = vmatpush1.bf16.msra.mxu1 %v306_v50 }
  0x38   :  { %309 = vmatprep.subr.bf16.mxu0 %v308_v51  ;;  %322 = vmatprep.subr.bf16.mxu1 %v308_v51 }
  0x3b   :  { %311 = vmatpush1.bf16.msra.mxu0 %v310_v56  ;;  %330 = vmatpush1.bf16.msra.mxu1 %v310_v56 }
  0x3c   :  { %313 = vmatprep.subr.bf16.mxu0 %v312_v57  ;;  %323 = vmatprep.subr.bf16.mxu1 %v312_v57 }
  0x3f   :  { %315 = vmatpush1.bf16.msra.mxu0 %v314_v60  ;;  %331 = vmatpush1.bf16.msra.mxu1 %v314_v60 }
  0x94   :  { %v338_v61 = vpop.permute.xlu0 %337  ;;  %v348_v62 = vpop.permute.xlu1 %347 }
  0x95   :  { %v340_v63 = vunpack.i.h.bf16 %v338_v61  ;;  %v339_v0 = vunpack.i.l.bf16 %v338_v61  ;;  %v350_v1 = vunpack.i.h.bf16 %v348_v62  ;;  %v349_v2 = vunpack.i.l.bf16 %v348_v62 }
  0x97   :  { %v62_v4 = vsel %vm61_vm0, %v339_v0, %v340_v63  ;;  %v70_v6 = vsel %vm61_vm0, %v349_v2, %v350_v1 }
  0x98   :  { %v343_v7 = vpop.permute.xlu0 %342  ;;  %v89_v8 = vsel %vm88_vm1, %v47_v3, %v62_v4  ;;  %v353_v10 = vpop.permute.xlu1 %352  ;;  %v90_v16 = vsel %vm88_vm1, %v49_v5, %v70_v6 }
  0x99   :  { %v345_v11 = vunpack.i.h.bf16 %v343_v7  ;;  %v344_v12 = vunpack.i.l.bf16 %v343_v7  ;;  %190 = vmatmul.mubr.f32.vlgmr.msra.gmra.mrb[0].mxu0 %v89_v8  ;;  %v355_v13 = vunpack.i.h.bf16 %v353_v10  ;;  %v354_v14 = vunpack.i.l.bf16 %v353_v10 }
  0x9a   :  { %195 = vmatprep.mubr.f32.mxu0 %v390_v9 }
  0x9b   :  { %v78_v17 = vsel %vm61_vm0, %v344_v12, %v345_v11  ;;  %v86_v19 = vsel %vm61_vm0, %v354_v14, %v355_v13 }
  0x9c   :  { %v91_v20 = vsel %vm88_vm1, %v51_v15, %v78_v17  ;;  %v92_v21 = vsel %vm88_vm1, %v53_v18, %v86_v19 }
  0x9d   :  { %196 = vmatmul.mubr.f32.gmra.mrb[2].mxu0 %v90_v16  ;;  %202 = vmatmul.mubr.f32.vlgmr.msra.gmra.mrb[0].mxu1 %v91_v20 }
  0x9e   :  { %207 = vmatprep.mubr.f32.mxu1 %v390_v9  ;;  %v243_v9 = vld [vmem:[%s598_s2 + $0x1] sm:$0x1] }
  0x9f   :  { %v245_v26 = vmul.f32 %v244_v25, %v243_v9 }
  0xa1   :  { %208 = vmatmul.mubr.f32.gmra.mrb[2].mxu1 %v92_v21  ;;  %v250_v28 = vrot.slane %v245_v26, 6  ;;  %v252_v30 = vrot.slane %v245_v26, 5 }
  0xa3   :  { %v257_v31 = vsel %vm256_vm3, %v255_v29, %v250_v28 }
  0xa4   :  { %v259_v32 = vsel %vm258_vm4, %v257_v31, %v252_v30 }
  0xa5   :  { %v261_v33 = vrot.slane %v259_v32, 4 }
  0xa7   :  { %v263_v38 = vsel %vm88_vm1, %v259_v32, %v261_v33 }
 0x16c   :  { %v191_v34 = vpop.f32.mrb[0].mxu0 }
 0x16d   :  { %v214_v35 = vmul.f32 %v191_v34, %v191_v34  ;;  %v193_v36 = vpop.f32.mrb[1].mxu0 }
 0x16e   :  { %v218_v37 = vmul.f32 %v193_v36, %v193_v36 }
 0x170   :  { %v222_v39 = vadd.f32 %v218_v37, %v214_v35  ;;  %v197_v40 = vpop.f32.mrb[2].mxu0  ;;  %v203_v41 = vpop.f32.mrb[0].mxu1 }
 0x171   :  { %v215_v42 = vmul.f32 %v197_v40, %v197_v40  ;;  %v216_v43 = vmul.f32 %v203_v41, %v203_v41  ;;  %v199_v44 = vpop.f32.mrb[3].mxu0  ;;  %v205_v45 = vpop.f32.mrb[1].mxu1 }
 0x172   :  { %226 = vst [vmem:[%s601_s5] sm:$0xff] %v222_v39  ;;  %v264_v46 = vmul.f32 %v263_v38, %v222_v39  ;;  %v219_v47 = vmul.f32 %v199_v44, %v199_v44  ;;  %v220_v48 = vmul.f32 %v205_v45, %v205_v45 }
 0x174   :  { %268 = vst [vmem:[%s602_s6] sm:$0xff] %v264_v46  ;;  %v223_v49 = vadd.f32 %v219_v47, %v215_v42  ;;  %v224_v50 = vadd.f32 %v220_v48, %v216_v43  ;;  %v209_v51 = vpop.f32.mrb[2].mxu1 }
 0x175   :  { %v217_v52 = vmul.f32 %v209_v51, %v209_v51  ;;  %v211_v53 = vpop.f32.mrb[3].mxu1 }
 0x176   :  { %227 = vst [vmem:[%s601_s5 + $0x8] sm:$0xff] %v223_v49  ;;  %v265_v54 = vmul.f32 %v263_v38, %v223_v49  ;;  %228 = vst [vmem:[%s601_s5 + $0x10] sm:$0xff] %v224_v50  ;;  %v266_v55 = vmul.f32 %v263_v38, %v224_v50  ;;  %v221_v56 = vmul.f32 %v211_v53, %v211_v53 }
 0x178   :  { %269 = vst [vmem:[%s602_s6 + $0x8] sm:$0xff] %v265_v54  ;;  %270 = vst [vmem:[%s602_s6 + $0x10] sm:$0xff] %v266_v55  ;;  %v225_v57 = vadd.f32 %v221_v56, %v217_v52 }
 0x17a   :  { %229 = vst [vmem:[%s601_s5 + $0x18] sm:$0xff] %v225_v57  ;;  %v267_v58 = vmul.f32 %v263_v38, %v225_v57 }
 0x17c   :  { %271 = vst [vmem:[%s602_s6 + $0x18] sm:$0xff] %v267_v58 }
 0x17d   :  { %280 = vsyncpa [#allocation3], 1 }
 0x17e   :  { %281 = vsyncpa [#allocation5], 1 }

</bundles_post_ra>
